<compile_context>
chip_gen: v6e
topology: v6e:2x2x1
jax: 0.10.0
libtpu: 0.0.40
codegen_flags: <defaults>
</compile_context>

<pallas_src>
import jax
import jax.numpy as jnp
from jax.experimental import pallas as pl
from jax.experimental.pallas import tpu as pltpu

LOG_STD_MAX = 2.0
LOG_STD_MIN = -5.0
# LOG_STD_MIN + 0.5*(MAX-MIN)*(tanh(z)+1)  ==  SCALE*tanh(z) + OFFSET
LOGSTD_SCALE = 0.5 * (LOG_STD_MAX - LOG_STD_MIN)   # 3.5
LOGSTD_OFFSET = LOG_STD_MIN + LOGSTD_SCALE         # -1.5

HIDDEN = 256
LANE = 128        # pad each head to a full lane width -> unmasked vst
TILE_B_MAX = 256  # multiple of 8; sized with v7x's smaller (64 MiB) VMEM in mind


def actor_kernel(x_ref, w1_ref, b1_ref, w2_ref, b2_ref, wh_ref, bh_ref,
                 mean_ref, logstd_ref):
    # fc1 + relu  (bf16 MXU inputs, f32 accumulation)
    h1 = jnp.dot(x_ref[...].astype(jnp.bfloat16), w1_ref[...],
                 preferred_element_type=jnp.float32) + b1_ref[...]
    h1 = jnp.maximum(h1, 0.0)

    # fc2 + relu
    h2 = jnp.dot(h1.astype(jnp.bfloat16), w2_ref[...],
                 preferred_element_type=jnp.float32) + b2_ref[...]
    h2 = jnp.maximum(h2, 0.0)

    # fused heads: columns = [fc_mean (padded to LANE) | fc_logstd (padded to LANE)]
    head = jnp.dot(h2.astype(jnp.bfloat16), wh_ref[...],
                   preferred_element_type=jnp.float32) + bh_ref[...]

    pad = mean_ref.shape[-1]
    mean = head[:, :pad]
    log_std = LOGSTD_SCALE * jnp.tanh(head[:, pad:]) + LOGSTD_OFFSET

    mean_ref[...] = mean.astype(mean_ref.dtype)
    logstd_ref[...] = log_std.astype(logstd_ref.dtype)


def _round_up(x, m):
    return ((x + m - 1) // m) * m


def prepare_actor_params(p):
    """One-time conversion of raw f32 (in,out)/(1,out) params into kernel layout:
    bf16 weights, heads fused and zero-padded to LANE columns each."""
    action_dim = p["wm"].shape[1]
    pad = _round_up(max(action_dim, LANE), LANE)

    def pad_cols(a):
        return jnp.pad(a, ((0, 0), (0, pad - a.shape[1])))

    wh = jnp.concatenate([pad_cols(p["wm"]), pad_cols(p["ws"])], axis=1)
    bh = jnp.concatenate([pad_cols(p["bm"]), pad_cols(p["bs"])], axis=1)
    return dict(
        w1=p["w1"].astype(jnp.bfloat16), b1=p["b1"].astype(jnp.float32),
        w2=p["w2"].astype(jnp.bfloat16), b2=p["b2"].astype(jnp.float32),
        wh=wh.astype(jnp.bfloat16), bh=bh.astype(jnp.float32),
        action_dim=action_dim, pad_dim=pad,
    )


def actor_forward(x, kp):
    """x: (B, state_dim) f32. kp: output of prepare_actor_params."""
    B, state_dim = x.shape
    action_dim = kp["action_dim"]
    pad = kp["pad_dim"]
    hidden = kp["w1"].shape[1]

    # Batch tiling: single full-B tile for small B, otherwise TILE_B_MAX rows
    # (pad B up so every block is full -> no partial-tile surprises).
    tile_b = B if B <= TILE_B_MAX else TILE_B_MAX
    pad_rows = (-B) % tile_b
    if pad_rows:
        x = jnp.pad(x, ((0, pad_rows), (0, 0)))
    Bp = B + pad_rows
    num_tiles = Bp // tile_b

    def batch_spec(shape):
        return pl.BlockSpec(shape, lambda i: (i, 0))

    def const_spec(shape):
        return pl.BlockSpec(shape, lambda i: (0, 0))  # weights stay resident

    flops = 2 * Bp * (state_dim * hidden + hidden * hidden + hidden * 2 * pad)
    bytes_accessed = (
        Bp * state_dim * 4                                   # x
        + (kp["w1"].size + kp["w2"].size + kp["wh"].size) * 2  # bf16 weights
        + (kp["b1"].size + kp["b2"].size + kp["bh"].size) * 4  # f32 biases
        + 2 * Bp * pad * 4                                   # outputs
    )

    mean_p, logstd_p = pl.pallas_call(
        actor_kernel,
        out_shape=(jax.ShapeDtypeStruct((Bp, pad), jnp.float32),
                   jax.ShapeDtypeStruct((Bp, pad), jnp.float32)),
        grid=(num_tiles,),
        in_specs=[
            batch_spec((tile_b, state_dim)),
            const_spec((state_dim, hidden)), const_spec((1, hidden)),
            const_spec((hidden, hidden)),    const_spec((1, hidden)),
            const_spec((hidden, 2 * pad)),   const_spec((1, 2 * pad)),
        ],
        out_specs=(batch_spec((tile_b, pad)), batch_spec((tile_b, pad))),
        compiler_params=pltpu.CompilerParams(
            dimension_semantics=("parallel",)),
        cost_estimate=pl.CostEstimate(flops=flops,
                                      transcendentals=Bp * pad,
                                      bytes_accessed=bytes_accessed),
    )(x, kp["w1"], kp["b1"], kp["w2"], kp["b2"], kp["wh"], kp["bh"])

    return mean_p[:B, :action_dim], logstd_p[:B, :action_dim]


# ----------------------------------------------------------------------------
# Parameter construction & pure-JAX reference (f32, matches the PyTorch module)
# ----------------------------------------------------------------------------
def init_linear(key, fan_in, fan_out):
    # PyTorch nn.Linear default init: U(-1/sqrt(fan_in), 1/sqrt(fan_in))
    kw, kb = jax.random.split(key)
    bound = 1.0 / jnp.sqrt(jnp.float32(fan_in))
    w = jax.random.uniform(kw, (fan_in, fan_out), jnp.float32, -bound, bound)
    b = jax.random.uniform(kb, (1, fan_out), jnp.float32, -bound, bound)
    return w, b


def make_params(key, state_dim, action_dim, hidden=HIDDEN):
    k1, k2, k3, k4 = jax.random.split(key, 4)
    w1, b1 = init_linear(k1, state_dim, hidden)
    w2, b2 = init_linear(k2, hidden, hidden)
    wm, bm = init_linear(k3, hidden, action_dim)
    ws, bs = init_linear(k4, hidden, action_dim)
    return dict(w1=w1, b1=b1, w2=w2, b2=b2, wm=wm, bm=bm, ws=ws, bs=bs)


def actor_reference(x, p):
    h1 = jnp.maximum(x @ p["w1"] + p["b1"], 0.0)
    h2 = jnp.maximum(h1 @ p["w2"] + p["b2"], 0.0)
    mean = h2 @ p["wm"] + p["bm"]
    ls = jnp.tanh(h2 @ p["ws"] + p["bs"])
    ls = LOG_STD_MIN + 0.5 * (LOG_STD_MAX - LOG_STD_MIN) * (ls + 1.0)
    return mean, ls


if __name__ == "__main__":
    key = jax.random.PRNGKey(0)
    k_params, k_x = jax.random.split(key)

    batch = 2
    state_dim = 16
    action_dim = 8

    params = make_params(k_params, state_dim, action_dim)
    kparams = prepare_actor_params(params)
    x = jax.random.normal(k_x, (batch, state_dim), jnp.float32)

    mean, log_std = actor_forward(x, kparams)
    jax.block_until_ready((mean, log_std))

    # Sanity check against the f32 pure-JAX reference. Tolerance is loosened
    # because the kernel feeds the MXU bf16 inputs (f32 accumulation) — an
    # accepted precision tradeoff for policy-network inference.
    mean_ref, log_std_ref = actor_reference(x, params)
    assert mean.shape == (batch, action_dim)
    assert log_std.shape == (batch, action_dim)
    assert jnp.allclose(mean, mean_ref, atol=2e-2, rtol=2e-2), (
        jnp.max(jnp.abs(mean - mean_ref)))
    assert jnp.allclose(log_std, log_std_ref, atol=2e-2, rtol=2e-2), (
        jnp.max(jnp.abs(log_std - log_std_ref)))

    print("KERNEL_OK")
</pallas_src>

<mosaic_0001>
module attributes {stable_mosaic.version = 11 : i64} {
  func.func @actor_kernel(%arg0: i32, %arg1: memref<2x16xf32, #tpu.memory_space<vmem>>, %arg2: memref<16x256xbf16, #tpu.memory_space<vmem>>, %arg3: memref<1x256xf32, #tpu.memory_space<vmem>>, %arg4: memref<256x256xbf16, #tpu.memory_space<vmem>>, %arg5: memref<1x256xf32, #tpu.memory_space<vmem>>, %arg6: memref<256x256xbf16, #tpu.memory_space<vmem>>, %arg7: memref<1x256xf32, #tpu.memory_space<vmem>>, %arg8: memref<2x128xf32, #tpu.memory_space<vmem>>, %arg9: memref<2x128xf32, #tpu.memory_space<vmem>>) attributes {dimension_semantics = [#tpu.dimension_semantics<parallel>], iteration_bounds = array<i64: 1>, scalar_prefetch = 0 : i64, scratch_operands = 0 : i64, tpu.core_type = #tpu.core_type<tc>, window_params = [{transform_indices = @transform_0, window_bounds = array<i64: 2, 16>}, {pipeline_mode = #tpu.pipeline_mode<synchronous>, transform_indices = @transform_1, window_bounds = array<i64: 16, 256>}, {pipeline_mode = #tpu.pipeline_mode<synchronous>, transform_indices = @transform_2, window_bounds = array<i64: 1, 256>}, {pipeline_mode = #tpu.pipeline_mode<synchronous>, transform_indices = @transform_3, window_bounds = array<i64: 256, 256>}, {pipeline_mode = #tpu.pipeline_mode<synchronous>, transform_indices = @transform_4, window_bounds = array<i64: 1, 256>}, {pipeline_mode = #tpu.pipeline_mode<synchronous>, transform_indices = @transform_5, window_bounds = array<i64: 256, 256>}, {pipeline_mode = #tpu.pipeline_mode<synchronous>, transform_indices = @transform_6, window_bounds = array<i64: 1, 256>}, {transform_indices = @transform_7, window_bounds = array<i64: 2, 128>}, {transform_indices = @transform_8, window_bounds = array<i64: 2, 128>}]} {
    %c0 = arith.constant 0 : index
    %c0_0 = arith.constant 0 : index
    %0 = vector.load %arg1[%c0, %c0_0] : memref<2x16xf32, #tpu.memory_space<vmem>>, vector<2x16xf32>
    %1 = arith.truncf %0 : vector<2x16xf32> to vector<2x16xbf16>
    %c0_1 = arith.constant 0 : index
    %c0_2 = arith.constant 0 : index
    %2 = vector.load %arg2[%c0_1, %c0_2] : memref<16x256xbf16, #tpu.memory_space<vmem>>, vector<16x256xbf16>
    %cst = arith.constant dense<0.000000e+00> : vector<2x256xf32>
    %3 = tpu.matmul %1, %2, %cst {dimension_numbers = #tpu.dot_dimension_numbers<[1], [0], [0], [1], [0, 0, 1, 1], [], []>} : vector<2x16xbf16>, vector<16x256xbf16>, vector<2x256xf32> -> vector<2x256xf32>
    %c0_3 = arith.constant 0 : index
    %c0_4 = arith.constant 0 : index
    %4 = vector.load %arg3[%c0_3, %c0_4] : memref<1x256xf32, #tpu.memory_space<vmem>>, vector<1x256xf32>
    %5 = vector.broadcast %4 : vector<1x256xf32> to vector<2x256xf32>
    %6 = arith.addf %3, %5 : vector<2x256xf32>
    %cst_5 = arith.constant 0.000000e+00 : f32
    %7 = vector.broadcast %cst_5 : f32 to vector<2x256xf32>
    %8 = arith.maximumf %6, %7 : vector<2x256xf32>
    %9 = arith.truncf %8 : vector<2x256xf32> to vector<2x256xbf16>
    %c0_6 = arith.constant 0 : index
    %c0_7 = arith.constant 0 : index
    %10 = vector.load %arg4[%c0_6, %c0_7] : memref<256x256xbf16, #tpu.memory_space<vmem>>, vector<256x256xbf16>
    %cst_8 = arith.constant dense<0.000000e+00> : vector<2x256xf32>
    %11 = tpu.matmul %9, %10, %cst_8 {dimension_numbers = #tpu.dot_dimension_numbers<[1], [0], [0], [1], [0, 0, 1, 1], [], []>} : vector<2x256xbf16>, vector<256x256xbf16>, vector<2x256xf32> -> vector<2x256xf32>
    %c0_9 = arith.constant 0 : index
    %c0_10 = arith.constant 0 : index
    %12 = vector.load %arg5[%c0_9, %c0_10] : memref<1x256xf32, #tpu.memory_space<vmem>>, vector<1x256xf32>
    %13 = vector.broadcast %12 : vector<1x256xf32> to vector<2x256xf32>
    %14 = arith.addf %11, %13 : vector<2x256xf32>
    %cst_11 = arith.constant 0.000000e+00 : f32
    %15 = vector.broadcast %cst_11 : f32 to vector<2x256xf32>
    %16 = arith.maximumf %14, %15 : vector<2x256xf32>
    %17 = arith.truncf %16 : vector<2x256xf32> to vector<2x256xbf16>
    %c0_12 = arith.constant 0 : index
    %c0_13 = arith.constant 0 : index
    %18 = vector.load %arg6[%c0_12, %c0_13] : memref<256x256xbf16, #tpu.memory_space<vmem>>, vector<256x256xbf16>
    %cst_14 = arith.constant dense<0.000000e+00> : vector<2x256xf32>
    %19 = tpu.matmul %17, %18, %cst_14 {dimension_numbers = #tpu.dot_dimension_numbers<[1], [0], [0], [1], [0, 0, 1, 1], [], []>} : vector<2x256xbf16>, vector<256x256xbf16>, vector<2x256xf32> -> vector<2x256xf32>
    %c0_15 = arith.constant 0 : index
    %c0_16 = arith.constant 0 : index
    %20 = vector.load %arg7[%c0_15, %c0_16] : memref<1x256xf32, #tpu.memory_space<vmem>>, vector<1x256xf32>
    %21 = vector.broadcast %20 : vector<1x256xf32> to vector<2x256xf32>
    %22 = arith.addf %19, %21 : vector<2x256xf32>
    %23 = vector.extract_strided_slice %22 {offsets = [0, 0], sizes = [2, 128], strides = [1, 1]} : vector<2x256xf32> to vector<2x128xf32>
    %24 = vector.extract_strided_slice %22 {offsets = [0, 128], sizes = [2, 128], strides = [1, 1]} : vector<2x256xf32> to vector<2x128xf32>
    %25 = math.tanh %24 : vector<2x128xf32>
    %cst_17 = arith.constant 3.500000e+00 : f32
    %26 = vector.broadcast %cst_17 : f32 to vector<2x128xf32>
    %27 = arith.mulf %26, %25 : vector<2x128xf32>
    %cst_18 = arith.constant -1.500000e+00 : f32
    %28 = vector.broadcast %cst_18 : f32 to vector<2x128xf32>
    %29 = arith.addf %27, %28 : vector<2x128xf32>
    %c0_19 = arith.constant 0 : index
    %c0_20 = arith.constant 0 : index
    %30 = vector.load %arg8[%c0_19, %c0_20] : memref<2x128xf32, #tpu.memory_space<vmem>>, vector<2x128xf32>
    tpu.vector_store %arg8[%c0_19, %c0_20], %23 {strides = array<i32>} : memref<2x128xf32, #tpu.memory_space<vmem>>, vector<2x128xf32>,
    %c0_21 = arith.constant 0 : index
    %c0_22 = arith.constant 0 : index
    %31 = vector.load %arg9[%c0_21, %c0_22] : memref<2x128xf32, #tpu.memory_space<vmem>>, vector<2x128xf32>
    tpu.vector_store %arg9[%c0_21, %c0_22], %29 {strides = array<i32>} : memref<2x128xf32, #tpu.memory_space<vmem>>, vector<2x128xf32>,
    return
  }
  func.func @transform_0(%arg0: i32) -> (i32, i32) {
    %c0_i32 = arith.constant 0 : i32
    %c0_i32_0 = arith.constant 0 : i32
    return %arg0, %c0_i32 : i32, i32
  }
  func.func @transform_1(%arg0: i32) -> (i32, i32) {
    %c0_i32 = arith.constant 0 : i32
    %c0_i32_0 = arith.constant 0 : i32
    %c0_i32_1 = arith.constant 0 : i32
    return %c0_i32, %c0_i32_0 : i32, i32
  }
  func.func @transform_2(%arg0: i32) -> (i32, i32) {
    %c0_i32 = arith.constant 0 : i32
    %c0_i32_0 = arith.constant 0 : i32
    %c0_i32_1 = arith.constant 0 : i32
    return %c0_i32, %c0_i32_0 : i32, i32
  }
  func.func @transform_3(%arg0: i32) -> (i32, i32) {
    %c0_i32 = arith.constant 0 : i32
    %c0_i32_0 = arith.constant 0 : i32
    %c0_i32_1 = arith.constant 0 : i32
    return %c0_i32, %c0_i32_0 : i32, i32
  }
  func.func @transform_4(%arg0: i32) -> (i32, i32) {
    %c0_i32 = arith.constant 0 : i32
    %c0_i32_0 = arith.constant 0 : i32
    %c0_i32_1 = arith.constant 0 : i32
    return %c0_i32, %c0_i32_0 : i32, i32
  }
  func.func @transform_5(%arg0: i32) -> (i32, i32) {
    %c0_i32 = arith.constant 0 : i32
    %c0_i32_0 = arith.constant 0 : i32
    %c0_i32_1 = arith.constant 0 : i32
    return %c0_i32, %c0_i32_0 : i32, i32
  }
  func.func @transform_6(%arg0: i32) -> (i32, i32) {
    %c0_i32 = arith.constant 0 : i32
    %c0_i32_0 = arith.constant 0 : i32
    %c0_i32_1 = arith.constant 0 : i32
    return %c0_i32, %c0_i32_0 : i32, i32
  }
  func.func @transform_7(%arg0: i32) -> (i32, i32) {
    %c0_i32 = arith.constant 0 : i32
    %c0_i32_0 = arith.constant 0 : i32
    return %arg0, %c0_i32 : i32, i32
  }
  func.func @transform_8(%arg0: i32) -> (i32, i32) {
    %c0_i32 = arith.constant 0 : i32
    %c0_i32_0 = arith.constant 0 : i32
    return %arg0, %c0_i32 : i32, i32
  }
}

</mosaic_0001>

<bundles_post_ra>
// kernel: tpu_custom_call.1
= control target key start
LH: loop header
LB: loop body
LE: loop exit
PB: predicated region body
PF: predicated region fallthrough
CT: control target
= control target key end

     0   :  { %14 = vsyncpa [#allocation3], 0  ;;  %s1086_s0 = inlined_call_operand.hbm [shape: f32[2,16], index: 0, kind: input, shape index: {}]   ;;  %s1087_s1 = inlined_call_operand.hbm [shape: bf16[16,256], index: 1, kind: input, shape index: {}]   ;;  %s1088_s2 = inlined_call_operand.vmem [shape: f32[1,256], index: 2, kind: input, shape index: {}]   ;;  %s1089_s3 = inlined_call_operand.hbm [shape: bf16[256,256], index: 3, kind: input, shape index: {}]   ;;  %s1090_s4 = inlined_call_operand.vmem [shape: f32[1,256], index: 4, kind: input, shape index: {}]   ;;  %s1091_s5 = inlined_call_operand.hbm [shape: bf16[256,256], index: 5, kind: input, shape index: {}]   ;;  %s1092_s6 = inlined_call_operand.vmem [shape: f32[1,256], index: 6, kind: input, shape index: {}]   ;;  %s1093_s7 = inlined_call_operand.hbm [shape: f32[2,128], index: 7, kind: output, shape index: {0}]   ;;  %s1094_s8 = inlined_call_operand.hbm [shape: f32[2,128], index: 8, kind: output, shape index: {1}]  }
   0x1   :  { %15 = vsyncpa [#allocation6], 0 }
   0x2   :  { %16 = vsyncpa [#allocation9], 0 }
   0x3   :  { %17 = vsyncpa [#allocation4], 0 }
   0x4   :  { %18 = vsyncpa [#allocation12], 0  ;;  %s996_s27 = smov [#allocation5]  }
   0x5   :  { %s34_s28 = sshll.u32 %s996_s27, 4  ;;  %s35_s28 = int_to_ptr.vmem [resolvable:$true] %s34_s28 }
   0x6   :  { %s874_s29 = scalar_lea.vmem %s35_s28, 256  ;;  %p879_p1 = scmp.lt.s32.totalorder %s35_s28, %s35_s28 }
   0x7   :  { %p875_p0 = scmp.ne.s32.totalorder %s35_s28, %s874_s29  ;;  %p880_p2 = scmp.lt.s32.totalorder %s874_s29, %s874_s29 }
   0x9   :  { %p881_p3 = por %p880_p2, %p879_p1 }
   0xb   :  { %p882_p4 = pnand %p881_p3, %p875_p0 }
   0xd   :  { %885 = shalt.err (!%p882_p4)
}
   0xe   :  { %s997_s30 = smov 128   ;;  %s998_s9 = smov 8  }
   0xf   :  { %40 = dma.hbm_to_vmem [thread:$0]  %s1087_s1, 256, %s35_s28, [#allocation6], %s997_s30, %s997_s30, %s998_s9  }
  0x10   :  { %s999_s12 = smov [#allocation2]   ;;  %s1000_s14 = smov [#allocation7]  }
  0x11   :  { %s25_s13 = sshll.u32 %s999_s12, 4  ;;  %s48_s15 = sshll.u32 %s1000_s14, 4  ;;  %s26_s13 = int_to_ptr.vmem [resolvable:$true] %s25_s13  ;;  %s49_s15 = int_to_ptr.vmem [resolvable:$true] %s48_s15 }
  0x12   :  { %s894_s16 = scalar_lea.vmem %s26_s13, 32  ;;  %p899_p6 = scmp.lt.s32.totalorder %s26_s13, %s26_s13 }
  0x13   :  { %p895_p5 = scmp.ne.s32.totalorder %s26_s13, %s894_s16  ;;  %p900_p7 = scmp.lt.s32.totalorder %s894_s16, %s894_s16 }
  0x15   :  { %p901_p8 = por %p900_p7, %p899_p6 }
  0x17   :  { %p902_p9 = pnand %p901_p8, %p895_p5 }
  0x19   :  { %905 = shalt.err (!%p902_p9)
}
  0x1a   :  { %28 = dma.hbm_to_vmem [thread:$0]  %s1086_s0, 32, %s26_s13, [#allocation3]  }
  0x1b   :  { %s914_s19 = scalar_lea.vmem %s49_s15, 4096  ;;  %p919_p11 = scmp.lt.s32.totalorder %s49_s15, %s49_s15 }
  0x1c   :  { %p915_p10 = scmp.ne.s32.totalorder %s49_s15, %s914_s19  ;;  %p920_p12 = scmp.lt.s32.totalorder %s914_s19, %s914_s19 }
  0x1e   :  { %p921_p13 = por %p920_p12, %p919_p11 }
  0x20   :  { %p922_p0 = pnand %p921_p13, %p915_p10 }
  0x22   :  { %925 = shalt.err (!%p922_p0)
}
  0x23   :  { %54 = dma.hbm_to_vmem [thread:$0]  %s1089_s3, 4096, %s49_s15, [#allocation6], %s997_s30, %s997_s30, %s998_s9  }
  0x24   :  { %s1001_s21 = smov [#allocation8]  }
  0x25   :  { %s62_s22 = sshll.u32 %s1001_s21, 4  ;;  %s63_s22 = int_to_ptr.vmem [resolvable:$true] %s62_s22 }
  0x26   :  { %s934_s23 = scalar_lea.vmem %s63_s22, 4096  ;;  %p939_p2 = scmp.lt.s32.totalorder %s63_s22, %s63_s22 }
  0x27   :  { %p935_p1 = scmp.ne.s32.totalorder %s63_s22, %s934_s23  ;;  %p940_p3 = scmp.lt.s32.totalorder %s934_s23, %s934_s23 }
  0x29   :  { %p941_p4 = por %p940_p3, %p939_p2 }
  0x2b   :  { %p942_p5 = pnand %p941_p4, %p935_p1 }
  0x2d   :  { %945 = shalt.err (!%p942_p5)
}
  0x2e   :  { %68 = dma.hbm_to_vmem [thread:$0]  %s1091_s5, 4096, %s63_s22, [#allocation9], %s997_s30, %s997_s30, %s998_s9  }
  0x2f   :  { %986 = dma.done.wait [#allocation3], 32  }
  0x30   :  { %987 = vsyncadd [#allocation3], 4294967264 }
  0x31   :  { %988 = dma.done.wait [#allocation6], 4352  }
  0x32   :  { %989 = vsyncadd [#allocation6], 4294962944 }
  0x33   :  { %990 = dma.done.wait [#allocation9], 4096  }
  0x34   :  { %991 = vsyncadd [#allocation9], 4294963200  ;;  %v1002_v0 = vmov 0   ;;  %v765_v1 = vld [vmem:[#allocation5 + $0x4] ss:$8 sps:$4 sm:$0xff]   ;;  %vm110_vm0 = vcmask 130048  }
  0x35   :  { %146 = vmatprep.mubr.bf16.mxu0 %v1002_v0  ;;  %v767_v2 = vld [vmem:[#allocation5] ss:$8 sps:$4 sm:$0xff]   ;;  %v84_v3 = vld [vmem:[#allocation2] sm:$0x3]  ;;  %128 = vmatprep.subr.bf16.mxu0 %v765_v1  ;;  %v768_v5 = vld [vmem:[#allocation7 + $0x74] ss:$8 sps:$4 sm:$0xff]   ;;  %v90_v1 = vlaneseq }
  0x36   :  { %v85_v4 = vpack.c.bf16 %v84_v3, %v84_v3  ;;  %v770_v6 = vld [vmem:[#allocation7 + $0x70] ss:$8 sps:$4 sm:$0xff]   ;;  %129 = vmatpush1.bf16.msra.mxu0 %v767_v2  ;;  %v771_v7 = vld [vmem:[#allocation7 + $0x64] ss:$8 sps:$4 sm:$0xff]   ;;  %363 = vmatprep.subr.bf16.mxu1 %v768_v5  ;;  %v773_v8 = vld [vmem:[#allocation7 + $0x60] ss:$8 sps:$4 sm:$0xff]  }
  0x37   :  { %364 = vmatpush1.bf16.msra.mxu1 %v770_v6  ;;  %v774_v9 = vld [vmem:[#allocation7 + $0x54] ss:$8 sps:$4 sm:$0xff]   ;;  %v776_v10 = vld [vmem:[#allocation7 + $0x50] ss:$8 sps:$4 sm:$0xff]   ;;  %v777_v11 = vld [vmem:[#allocation7 + $0x44] ss:$8 sps:$4 sm:$0xff]  }
  0x38   :  { %365 = vmatprep.subr.bf16.mxu1 %v771_v7  ;;  %v779_v12 = vld [vmem:[#allocation7 + $0x40] ss:$8 sps:$4 sm:$0xff]   ;;  %v780_v13 = vld [vmem:[#allocation7 + $0x34] ss:$8 sps:$4 sm:$0xff]   ;;  %v782_v14 = vld [vmem:[#allocation7 + $0x30] ss:$8 sps:$4 sm:$0xff]  }
  0x39   :  { %691 = vmatmul.mubr.msk.bf16.vlgmr.msra.gmra.mxu0 %vm110_vm0, %v85_v4  ;;  %v783_v15 = vld [vmem:[#allocation7 + $0x24] ss:$8 sps:$4 sm:$0xff]   ;;  %v785_v16 = vld [vmem:[#allocation7 + $0x20] ss:$8 sps:$4 sm:$0xff]   ;;  %v786_v17 = vld [vmem:[#allocation7 + $0x14] ss:$8 sps:$4 sm:$0xff]  }
  0x3a   :  { %v788_v18 = vld [vmem:[#allocation7 + $0x10] ss:$8 sps:$4 sm:$0xff]   ;;  %v789_v19 = vld [vmem:[#allocation7 + $0x4] ss:$8 sps:$4 sm:$0xff]   ;;  %v791_v20 = vld [vmem:[#allocation7] ss:$8 sps:$4 sm:$0xff]  }
  0x3b   :  { %366 = vmatpush1.bf16.msra.mxu1 %v773_v8  ;;  %v792_v21 = vld [vmem:[#allocation7 + $0xf4] ss:$8 sps:$4 sm:$0xff]   ;;  %v794_v22 = vld [vmem:[#allocation7 + $0xf0] ss:$8 sps:$4 sm:$0xff]   ;;  %v795_v23 = vld [vmem:[#allocation7 + $0xe4] ss:$8 sps:$4 sm:$0xff]  }
  0x3c   :  { %367 = vmatprep.subr.bf16.mxu1 %v774_v9  ;;  %v797_v24 = vld [vmem:[#allocation7 + $0xe0] ss:$8 sps:$4 sm:$0xff]   ;;  %v798_v25 = vld [vmem:[#allocation7 + $0xd4] ss:$8 sps:$4 sm:$0xff]   ;;  %v800_v26 = vld [vmem:[#allocation7 + $0xd0] ss:$8 sps:$4 sm:$0xff]  }
  0x3d   :  { %v801_v27 = vld [vmem:[#allocation7 + $0xc4] ss:$8 sps:$4 sm:$0xff]   ;;  %v803_v28 = vld [vmem:[#allocation7 + $0xc0] ss:$8 sps:$4 sm:$0xff]   ;;  %v804_v29 = vld [vmem:[#allocation7 + $0xb4] ss:$8 sps:$4 sm:$0xff]  }
  0x3e   :  { %v806_v30 = vld [vmem:[#allocation7 + $0xb0] ss:$8 sps:$4 sm:$0xff]   ;;  %v807_v31 = vld [vmem:[#allocation7 + $0xa4] ss:$8 sps:$4 sm:$0xff]   ;;  %v809_v32 = vld [vmem:[#allocation7 + $0xa0] ss:$8 sps:$4 sm:$0xff]  }
  0x3f   :  { %368 = vmatpush1.bf16.msra.mxu1 %v776_v10  ;;  %v810_v33 = vld [vmem:[#allocation7 + $0x94] ss:$8 sps:$4 sm:$0xff]   ;;  %v812_v34 = vld [vmem:[#allocation7 + $0x90] ss:$8 sps:$4 sm:$0xff]   ;;  %v813_v35 = vld [vmem:[#allocation7 + $0x84] ss:$8 sps:$4 sm:$0xff]  }
  0x40   :  { %369 = vmatprep.subr.bf16.mxu1 %v777_v11  ;;  %v815_v36 = vld [vmem:[#allocation7 + $0x80] ss:$8 sps:$4 sm:$0xff]   ;;  %v816_v37 = vld [vmem:[#allocation8 + $0x70] ss:$8 sps:$4 sm:$0xff]   ;;  %v818_v38 = vld [vmem:[#allocation8 + $0x74] ss:$8 sps:$4 sm:$0xff]  }
  0x41   :  { %v821_v39 = vld [vmem:[#allocation8 + $0x64] ss:$8 sps:$4 sm:$0xff]   ;;  %612 = vmatprep.subr.bf16.mxu0 %v818_v38  ;;  %v819_v40 = vld [vmem:[#allocation8 + $0x60] ss:$8 sps:$4 sm:$0xff]   ;;  %v824_v41 = vld [vmem:[#allocation8 + $0x54] ss:$8 sps:$4 sm:$0xff]  }
  0x42   :  { %613 = vmatpush1.bf16.msra.mxu0 %v816_v37  ;;  %v822_v42 = vld [vmem:[#allocation8 + $0x50] ss:$8 sps:$4 sm:$0xff]   ;;  %v827_v43 = vld [vmem:[#allocation8 + $0x44] ss:$8 sps:$4 sm:$0xff]   ;;  %v825_v44 = vld [vmem:[#allocation8 + $0x40] ss:$8 sps:$4 sm:$0xff]  }
  0x43   :  { %370 = vmatpush1.bf16.msra.mxu1 %v779_v12  ;;  %614 = vmatprep.subr.bf16.mxu0 %v821_v39  ;;  %v830_v45 = vld [vmem:[#allocation8 + $0x34] ss:$8 sps:$4 sm:$0xff]   ;;  %v828_v46 = vld [vmem:[#allocation8 + $0x30] ss:$8 sps:$4 sm:$0xff]   ;;  %v833_v47 = vld [vmem:[#allocation8 + $0x24] ss:$8 sps:$4 sm:$0xff]  }
  0x44   :  { %371 = vmatprep.subr.bf16.mxu1 %v780_v13  ;;  %v831_v48 = vld [vmem:[#allocation8 + $0x20] ss:$8 sps:$4 sm:$0xff]   ;;  %v836_v49 = vld [vmem:[#allocation8 + $0x14] ss:$8 sps:$4 sm:$0xff]   ;;  %v834_v50 = vld [vmem:[#allocation8 + $0x10] ss:$8 sps:$4 sm:$0xff]  }
  0x45   :  { %v839_v51 = vld [vmem:[#allocation8 + $0x4] ss:$8 sps:$4 sm:$0xff]   ;;  %v837_v52 = vld [vmem:[#allocation8] ss:$8 sps:$4 sm:$0xff]   ;;  %v842_v53 = vld [vmem:[#allocation8 + $0xf4] ss:$8 sps:$4 sm:$0xff]  }
  0x46   :  { %615 = vmatpush1.bf16.msra.mxu0 %v819_v40  ;;  %v840_v54 = vld [vmem:[#allocation8 + $0xf0] ss:$8 sps:$4 sm:$0xff]   ;;  %v845_v55 = vld [vmem:[#allocation8 + $0xe4] ss:$8 sps:$4 sm:$0xff]   ;;  %v843_v56 = vld [vmem:[#allocation8 + $0xe0] ss:$8 sps:$4 sm:$0xff]  }
  0x47   :  { %372 = vmatpush1.bf16.msra.mxu1 %v782_v14  ;;  %616 = vmatprep.subr.bf16.mxu0 %v824_v41  ;;  %v848_v57 = vld [vmem:[#allocation8 + $0xd4] ss:$8 sps:$4 sm:$0xff]   ;;  %v846_v58 = vld [vmem:[#allocation8 + $0xd0] ss:$8 sps:$4 sm:$0xff]   ;;  %v851_v59 = vld [vmem:[#allocation8 + $0xc4] ss:$8 sps:$4 sm:$0xff]  }
  0x48   :  { %373 = vmatprep.subr.bf16.mxu1 %v783_v15  ;;  %v849_v60 = vld [vmem:[#allocation8 + $0xc0] ss:$8 sps:$4 sm:$0xff]   ;;  %v854_v61 = vld [vmem:[#allocation8 + $0xb4] ss:$8 sps:$4 sm:$0xff]   ;;  %v852_v62 = vld [vmem:[#allocation8 + $0xb0] ss:$8 sps:$4 sm:$0xff]  }
  0x49   :  { %v857_v63 = vld [vmem:[#allocation8 + $0xa4] ss:$8 sps:$4 sm:$0xff]   ;;  %v855_v0 = vld [vmem:[#allocation8 + $0xa0] ss:$8 sps:$4 sm:$0xff]   ;;  %v91_v2 = vshrl.u32 %v90_v1, 7 }
  0x4a   :  { %617 = vmatpush1.bf16.msra.mxu0 %v822_v42  ;;  %v88_v4 = vld [vmem:[%s1088_s2] sm:$0x3] }
  0x4b   :  { %374 = vmatpush1.bf16.msra.mxu1 %v785_v16  ;;  %618 = vmatprep.subr.bf16.mxu0 %v827_v43  ;;  %v92_v3 = vsub.s32 0, %v91_v2  ;;  %v96_v5 = vsub.s32 1, %v91_v2 }
  0x4c   :  { %375 = vmatprep.subr.bf16.mxu1 %v786_v17 }
  0x4d   :  { %v93_v6 = vrot.slane %v88_v4, %v92_v3  ;;  %v97_v7 = vrot.slane %v88_v4, %v96_v5 }
  0x4e   :  { %619 = vmatpush1.bf16.msra.mxu0 %v825_v44 }
  0x4f   :  { %376 = vmatpush1.bf16.msra.mxu1 %v788_v18  ;;  %620 = vmatprep.subr.bf16.mxu0 %v830_v45  ;;  %v860_v18 = vld [vmem:[#allocation8 + $0x94] ss:$8 sps:$4 sm:$0xff]  }
  0x50   :  { %377 = vmatprep.subr.bf16.mxu1 %v789_v19  ;;  %v858_v19 = vld [vmem:[#allocation8 + $0x90] ss:$8 sps:$4 sm:$0xff]  }
  0x52   :  { %621 = vmatpush1.bf16.msra.mxu0 %v828_v46 }
  0x53   :  { %378 = vmatpush1.bf16.msra.mxu1 %v791_v20  ;;  %622 = vmatprep.subr.bf16.mxu0 %v833_v47  ;;  %v863_v20 = vld [vmem:[#allocation8 + $0x84] ss:$8 sps:$4 sm:$0xff]  }
  0x54   :  { %379 = vmatprep.subr.bf16.mxu1 %v792_v21  ;;  %v861_v21 = vld [vmem:[#allocation8 + $0x80] ss:$8 sps:$4 sm:$0xff]  }
  0x56   :  { %623 = vmatpush1.bf16.msra.mxu0 %v831_v48 }
  0x57   :  { %380 = vmatpush2.bf16.msra.mxu1 %v794_v22  ;;  %624 = vmatprep.subr.bf16.mxu0 %v836_v49  ;;  %v191_v22 = vld [vmem:[%s1090_s4] sm:$0x3]  ;;  %s1003_s4 = smov [#allocation10]  }
  0x58   :  { %381 = vmatprep.subr.bf16.mxu1 %v795_v23  ;;  %v196_v23 = vrot.slane %v191_v22, %v92_v3  ;;  %s664_s28 = sshll.u32 %s1003_s4, 4  ;;  %s665_s28 = int_to_ptr.vmem [resolvable:$true] %s664_s28 }
  0x59   :  { %s946_s29 = scalar_lea.vmem %s665_s28, 32  ;;  %p951_p7 = scmp.lt.s32.totalorder %s665_s28, %s665_s28 }
  0x5a   :  { %625 = vmatpush1.bf16.msra.mxu0 %v834_v50  ;;  %p947_p6 = scmp.ne.s32.totalorder %s665_s28, %s946_s29  ;;  %p952_p8 = scmp.lt.s32.totalorder %s946_s29, %s946_s29 }
  0x5b   :  { %382 = vmatpush2.bf16.msra.mxu1 %v797_v24  ;;  %626 = vmatprep.subr.bf16.mxu0 %v839_v51  ;;  %v200_v24 = vrot.slane %v191_v22, %v96_v5 }
  0x5c   :  { %383 = vmatprep.subr.bf16.mxu1 %v798_v25  ;;  %p953_p9 = por %p952_p8, %p951_p7 }
  0x5e   :  { %627 = vmatpush1.bf16.msra.mxu0 %v837_v52  ;;  %p954_p10 = pnand %p953_p9, %p947_p6 }
  0x5f   :  { %384 = vmatpush2.bf16.msra.mxu1 %v800_v26  ;;  %628 = vmatprep.subr.bf16.mxu0 %v842_v53 }
  0x60   :  { %385 = vmatprep.subr.bf16.mxu1 %v801_v27 }
  0x62   :  { %629 = vmatpush2.bf16.msra.mxu0 %v840_v54 }
  0x63   :  { %386 = vmatpush2.bf16.msra.mxu1 %v803_v28  ;;  %630 = vmatprep.subr.bf16.mxu0 %v845_v55 }
  0x64   :  { %387 = vmatprep.subr.bf16.mxu1 %v804_v29 }
  0x66   :  { %631 = vmatpush2.bf16.msra.mxu0 %v843_v56 }
  0x67   :  { %388 = vmatpush2.bf16.msra.mxu1 %v806_v30  ;;  %632 = vmatprep.subr.bf16.mxu0 %v848_v57 }
  0x68   :  { %389 = vmatprep.subr.bf16.mxu1 %v807_v31 }
  0x6a   :  { %633 = vmatpush2.bf16.msra.mxu0 %v846_v58 }
  0x6b   :  { %390 = vmatpush2.bf16.msra.mxu1 %v809_v32  ;;  %634 = vmatprep.subr.bf16.mxu0 %v851_v59 }
  0x6c   :  { %391 = vmatprep.subr.bf16.mxu1 %v810_v33 }
  0x6e   :  { %635 = vmatpush2.bf16.msra.mxu0 %v849_v60 }
  0x6f   :  { %392 = vmatpush2.bf16.msra.mxu1 %v812_v34  ;;  %636 = vmatprep.subr.bf16.mxu0 %v854_v61 }
  0x70   :  { %393 = vmatprep.subr.bf16.mxu1 %v813_v35  ;;  %v440_v35 = vld [vmem:[%s1092_s6] sm:$0x3] }
  0x71   :  { %v449_v37 = vrot.slane %v440_v35, %v96_v5 }
  0x72   :  { %637 = vmatpush2.bf16.msra.mxu0 %v852_v62 }
  0x73   :  { %394 = vmatpush2.bf16.msra.mxu1 %v815_v36  ;;  %638 = vmatprep.subr.bf16.mxu0 %v857_v63  ;;  %v445_v36 = vrot.slane %v440_v35, %v92_v3 }
  0x76   :  { %639 = vmatpush2.bf16.msra.mxu0 %v855_v0 }
  0x77   :  { %640 = vmatprep.subr.bf16.mxu0 %v860_v18 }
  0x7a   :  { %641 = vmatpush2.bf16.msra.mxu0 %v858_v19 }
  0x7b   :  { %642 = vmatprep.subr.bf16.mxu0 %v863_v20 }
  0x7e   :  { %643 = vmatpush2.bf16.msra.mxu0 %v861_v21 }
  0xf9   :  { %v148_v8 = vpop.f32.mrf.mxu0 }
  0xfa   :  { %v149_v9 = vadd.f32 %v148_v8, %v93_v6 }
  0xfb   :  { %v150_v10 = vpop.f32.mrf.mxu0 }
  0xfc   :  { %v151_v11 = vadd.f32 %v150_v10, %v97_v7  ;;  %v155_v12 = vmax.f32 %v149_v9, 0.0 }
  0xfd   :  { %v152_v13 = vpop.f32.mrf.mxu0 }
  0xfe   :  { %v156_v14 = vmax.f32 %v151_v11, 0.0  ;;  %v157_v17 = vpack.c.bf16 %v155_v12, %v155_v12 }
  0xff   :  { %v153_v15 = vpop.f32.mrf.mxu0 }
 0x100   :  { %v158_v16 = vpack.c.bf16 %v156_v14, %v156_v14 }
 0x102   :  { %395 = vmatprep.mubr.bf16.mxu1 %v158_v16 }
 0x103   :  { %396 = vmatmul.mubr.bf16.vlgmr.msra.gmra.mxu1 %v157_v17 }
 0x1c3   :  { %v397_v25 = vpop.f32.mrf.mxu1 }
 0x1c4   :  { %v398_v26 = vadd.f32 %v397_v25, %v196_v23 }
 0x1c5   :  { %v399_v27 = vpop.f32.mrf.mxu1 }
 0x1c6   :  { %v400_v28 = vadd.f32 %v399_v27, %v200_v24  ;;  %v404_v29 = vmax.f32 %v398_v26, 0.0 }
 0x1c7   :  { %v401_v30 = vpop.f32.mrf.mxu1 }
 0x1c8   :  { %v405_v31 = vmax.f32 %v400_v28, 0.0  ;;  %v406_v34 = vpack.c.bf16 %v404_v29, %v404_v29 }
 0x1c9   :  { %v402_v32 = vpop.f32.mrf.mxu1 }
 0x1ca   :  { %v407_v33 = vpack.c.bf16 %v405_v31, %v405_v31 }
 0x1cc   :  { %644 = vmatprep.mubr.bf16.mxu0 %v407_v33 }
 0x1cd   :  { %645 = vmatmul.mubr.bf16.vlgmr.msra.gmra.mxu0 %v406_v34 }
 0x28d   :  { %v646_v38 = vpop.f32.mrf.mxu0 }
 0x28e   :  { %v647_v39 = vadd.f32 %v646_v38, %v445_v36 }
 0x28f   :  { %v648_v40 = vpop.f32.mrf.mxu0 }
 0x290   :  { %656 = vst [vmem:[#allocation10] sm:$0x3] %v647_v39  ;;  %v649_v41 = vadd.f32 %v648_v40, %v449_v37 }
 0x291   :  { %v650_v42 = vpop.f32.mrf.mxu0 }
 0x292   :  { %957 = shalt.err (!%p954_p10)
}
 0x293   :  { %667 = dma.vmem_to_hbm [thread:$0]  %s665_s28, 32, %s1093_s7, [#allocation4]   ;;  %864 = vtanh.f32 %v649_v41  ;;  %v651_v43 = vpop.f32.mrf.mxu0 }
 0x294   :  { %s1004_s9 = smov [#allocation11]  }
 0x295   :  { %s674_s10 = sshll.u32 %s1004_s9, 4  ;;  %s675_s10 = int_to_ptr.vmem [resolvable:$true] %s674_s10 }
 0x296   :  { %s966_s11 = scalar_lea.vmem %s675_s10, 32  ;;  %p971_p12 = scmp.lt.s32.totalorder %s675_s10, %s675_s10 }
 0x297   :  { %p967_p11 = scmp.ne.s32.totalorder %s675_s10, %s966_s11  ;;  %p972_p13 = scmp.lt.s32.totalorder %s966_s11, %s966_s11 }
 0x299   :  { %p973_p0 = por %p972_p13, %p971_p12 }
 0x29b   :  { %p974_p1 = pnand %p973_p0, %p967_p11 }
 0x2a0   :  { %v865_v44 = vpop.eup %864 }
 0x2a1   :  { %v654_v45 = vmul.f32 3.5, %v865_v44 }
 0x2a3   :  { %v655_v46 = vadd.f32 -1.5, %v654_v45 }
 0x2a5   :  { %657 = vst [vmem:[#allocation11] sm:$0x3] %v655_v46 }
 0x2a6   :  { %977 = shalt.err (!%p974_p1)
}
 0x2a7   :  { %677 = dma.vmem_to_hbm [thread:$0]  %s675_s10, 32, %s1094_s8, [#allocation12]  }
 0x2a8   :  { %992 = dma.done.wait [#allocation4], 32  }
 0x2a9   :  { %993 = vsyncadd [#allocation4], 4294967264 }
 0x2aa   :  { %994 = dma.done.wait [#allocation12], 32  }
 0x2ab   :  { %995 = vsyncadd [#allocation12], 4294967264 }
 0x2ac   :  { %684 = vsyncpa [#allocation3], 1 }
 0x2ad   :  { %685 = vsyncpa [#allocation6], 1 }
 0x2ae   :  { %686 = vsyncpa [#allocation9], 1 }
 0x2af   :  { %687 = vsyncpa [#allocation4], 1 }
 0x2b0   :  { %688 = vsyncpa [#allocation12], 1 }

</bundles_post_ra>
